<compile_context>
chip_gen: v7x
topology: tpu7x:2x2x1
jax: 0.10.0
libtpu: 0.0.40
codegen_flags: <defaults>
</compile_context>

<pallas_src>
import jax
import jax.numpy as jnp
from jax.experimental import pallas as pl
from jax.experimental.pallas import tpu as pltpu  # noqa: F401  (TPU backend)

Y_DIM = 1
HID = 4
PAD = 128  # lane width; everything feature-wise is padded to this


def tent_mlp_kernel(y_ref, w1_ref, b1_ref, w2_ref, b2_ref, w3_ref, b3_ref,
                    w4_ref, b4_ref, w5_ref, b5_ref, o_ref):
    y = y_ref[...].astype(jnp.float32)                       # (B, 1)

    # Layer 1: Linear(1, H) -> ReLU as a broadcast FMA (avoid a K=1 matmul).
    h = jnp.maximum(y * w1_ref[...] + b1_ref[...], 0.0)      # (B, PAD)

    # Layers 2-4: Linear(H, H) -> ReLU, padded lane-dense MXU matmuls.
    h = jnp.maximum(
        jnp.dot(h, w2_ref[...], preferred_element_type=jnp.float32) + b2_ref[...], 0.0)
    h = jnp.maximum(
        jnp.dot(h, w3_ref[...], preferred_element_type=jnp.float32) + b3_ref[...], 0.0)
    h = jnp.maximum(
        jnp.dot(h, w4_ref[...], preferred_element_type=jnp.float32) + b4_ref[...], 0.0)

    # Layer 5: Linear(H, y_dim), output padded to 128 lanes (unmasked store).
    out = jnp.dot(h, w5_ref[...], preferred_element_type=jnp.float32) + b5_ref[...]
    o_ref[...] = out.astype(o_ref.dtype)


def _full_spec(shape):
    return pl.BlockSpec(shape, lambda: (0,) * len(shape))


def ode_func_tent(t, y, padded_params):
    """Pallas implementation of ODEFunc_Tent.forward(t, y). t is ignored.

    `padded_params` must come from `pad_params` (lane-padded weights/biases).
    Returns (B, Y_DIM).
    """
    del t
    w1, b1, w2, b2, w3, b3, w4, b4, w5, b5 = padded_params
    B = y.shape[0]

    args = (y, w1, b1, w2, b2, w3, b3, w4, b4, w5, b5)
    out_padded = pl.pallas_call(
        tent_mlp_kernel,
        out_shape=jax.ShapeDtypeStruct((B, PAD), y.dtype),
        grid=(),
        in_specs=[_full_spec(a.shape) for a in args],
        out_specs=_full_spec((B, PAD)),
    )(*args)
    return out_padded[:, :Y_DIM]


def init_params(key):
    """Deterministic parameters matching PyTorch Linear default init
    (uniform in +/- 1/sqrt(fan_in)), stored as (in, out) so the kernel
    computes y @ W + b == PyTorch's x @ W.T + b."""
    def linear(key, fan_in, fan_out):
        kw, kb = jax.random.split(key)
        bound = 1.0 / jnp.sqrt(fan_in)
        w = jax.random.uniform(kw, (fan_in, fan_out), jnp.float32, -bound, bound)
        b = jax.random.uniform(kb, (1, fan_out), jnp.float32, -bound, bound)
        return w, b

    k1, k2, k3, k4, k5 = jax.random.split(key, 5)
    w1, b1 = linear(k1, Y_DIM, HID)
    w2, b2 = linear(k2, HID, HID)
    w3, b3 = linear(k3, HID, HID)
    w4, b4 = linear(k4, HID, HID)
    w5, b5 = linear(k5, HID, Y_DIM)
    return (w1, b1, w2, b2, w3, b3, w4, b4, w5, b5)


def pad_params(params):
    """Zero-pad all feature dims to the 128-lane width (done once, outside the
    kernel, so repeated solver calls reuse the same padded device arrays)."""
    w1, b1, w2, b2, w3, b3, w4, b4, w5, b5 = params

    def pad_to(a, shape):
        return jnp.pad(a, [(0, tgt - cur) for cur, tgt in zip(a.shape, shape)])

    return (
        pad_to(w1, (Y_DIM, PAD)), pad_to(b1, (1, PAD)),
        pad_to(w2, (PAD, PAD)),   pad_to(b2, (1, PAD)),
        pad_to(w3, (PAD, PAD)),   pad_to(b3, (1, PAD)),
        pad_to(w4, (PAD, PAD)),   pad_to(b4, (1, PAD)),
        pad_to(w5, (PAD, PAD)),   pad_to(b5, (1, PAD)),
    )


def reference(t, y, params):
    """Pure-JAX reference for correctness checking (unpadded params)."""
    del t
    w1, b1, w2, b2, w3, b3, w4, b4, w5, b5 = params
    h = jnp.maximum(y @ w1 + b1, 0.0)
    h = jnp.maximum(h @ w2 + b2, 0.0)
    h = jnp.maximum(h @ w3 + b3, 0.0)
    h = jnp.maximum(h @ w4 + b4, 0.0)
    return h @ w5 + b5


if __name__ == "__main__":
    key = jax.random.PRNGKey(0)
    k_params, k_y = jax.random.split(key)

    params = init_params(k_params)
    padded = pad_params(params)

    batch = 8
    y = jax.random.normal(k_y, (batch, Y_DIM), dtype=jnp.float32)
    t = jnp.float32(0.0)  # unused by the module

    out = ode_func_tent(t, y, padded)
    out = jax.block_until_ready(out)

    ref = reference(t, y, params)
    assert out.shape == (batch, Y_DIM), out.shape
    assert jnp.allclose(out, ref, atol=1e-5, rtol=1e-5), (
        float(jnp.max(jnp.abs(out - ref))))

    print("KERNEL_OK")
</pallas_src>

<mosaic_0001>
module attributes {stable_mosaic.version = 11 : i64} {
  func.func @tent_mlp_kernel(%arg0: memref<8x1xf32, #tpu.memory_space<vmem>>, %arg1: memref<1x128xf32, #tpu.memory_space<vmem>>, %arg2: memref<1x128xf32, #tpu.memory_space<vmem>>, %arg3: memref<128x128xf32, #tpu.memory_space<vmem>>, %arg4: memref<1x128xf32, #tpu.memory_space<vmem>>, %arg5: memref<128x128xf32, #tpu.memory_space<vmem>>, %arg6: memref<1x128xf32, #tpu.memory_space<vmem>>, %arg7: memref<128x128xf32, #tpu.memory_space<vmem>>, %arg8: memref<1x128xf32, #tpu.memory_space<vmem>>, %arg9: memref<128x128xf32, #tpu.memory_space<vmem>>, %arg10: memref<1x128xf32, #tpu.memory_space<vmem>>, %arg11: memref<8x128xf32, #tpu.memory_space<vmem>>) attributes {dimension_semantics = [], scalar_prefetch = 0 : i64, scratch_operands = 0 : i64, tpu.core_type = #tpu.core_type<tc>} {
    %c0 = arith.constant 0 : index
    %c0_0 = arith.constant 0 : index
    %0 = vector.load %arg0[%c0, %c0_0] : memref<8x1xf32, #tpu.memory_space<vmem>>, vector<8x1xf32>
    %c0_1 = arith.constant 0 : index
    %c0_2 = arith.constant 0 : index
    %1 = vector.load %arg1[%c0_1, %c0_2] : memref<1x128xf32, #tpu.memory_space<vmem>>, vector<1x128xf32>
    %2 = vector.broadcast %0 : vector<8x1xf32> to vector<8x128xf32>
    %3 = vector.broadcast %1 : vector<1x128xf32> to vector<8x128xf32>
    %4 = arith.mulf %2, %3 : vector<8x128xf32>
    %c0_3 = arith.constant 0 : index
    %c0_4 = arith.constant 0 : index
    %5 = vector.load %arg2[%c0_3, %c0_4] : memref<1x128xf32, #tpu.memory_space<vmem>>, vector<1x128xf32>
    %6 = vector.broadcast %5 : vector<1x128xf32> to vector<8x128xf32>
    %7 = arith.addf %4, %6 : vector<8x128xf32>
    %cst = arith.constant 0.000000e+00 : f32
    %8 = vector.broadcast %cst : f32 to vector<8x128xf32>
    %9 = arith.maximumf %7, %8 : vector<8x128xf32>
    %c0_5 = arith.constant 0 : index
    %c0_6 = arith.constant 0 : index
    %10 = vector.load %arg3[%c0_5, %c0_6] : memref<128x128xf32, #tpu.memory_space<vmem>>, vector<128x128xf32>
    %cst_7 = arith.constant dense<0.000000e+00> : vector<8x128xf32>
    %11 = tpu.matmul %9, %10, %cst_7 {dimension_numbers = #tpu.dot_dimension_numbers<[1], [0], [0], [1], [0, 0, 1, 1], [], []>} : vector<8x128xf32>, vector<128x128xf32>, vector<8x128xf32> -> vector<8x128xf32>
    %c0_8 = arith.constant 0 : index
    %c0_9 = arith.constant 0 : index
    %12 = vector.load %arg4[%c0_8, %c0_9] : memref<1x128xf32, #tpu.memory_space<vmem>>, vector<1x128xf32>
    %13 = vector.broadcast %12 : vector<1x128xf32> to vector<8x128xf32>
    %14 = arith.addf %11, %13 : vector<8x128xf32>
    %cst_10 = arith.constant 0.000000e+00 : f32
    %15 = vector.broadcast %cst_10 : f32 to vector<8x128xf32>
    %16 = arith.maximumf %14, %15 : vector<8x128xf32>
    %c0_11 = arith.constant 0 : index
    %c0_12 = arith.constant 0 : index
    %17 = vector.load %arg5[%c0_11, %c0_12] : memref<128x128xf32, #tpu.memory_space<vmem>>, vector<128x128xf32>
    %cst_13 = arith.constant dense<0.000000e+00> : vector<8x128xf32>
    %18 = tpu.matmul %16, %17, %cst_13 {dimension_numbers = #tpu.dot_dimension_numbers<[1], [0], [0], [1], [0, 0, 1, 1], [], []>} : vector<8x128xf32>, vector<128x128xf32>, vector<8x128xf32> -> vector<8x128xf32>
    %c0_14 = arith.constant 0 : index
    %c0_15 = arith.constant 0 : index
    %19 = vector.load %arg6[%c0_14, %c0_15] : memref<1x128xf32, #tpu.memory_space<vmem>>, vector<1x128xf32>
    %20 = vector.broadcast %19 : vector<1x128xf32> to vector<8x128xf32>
    %21 = arith.addf %18, %20 : vector<8x128xf32>
    %cst_16 = arith.constant 0.000000e+00 : f32
    %22 = vector.broadcast %cst_16 : f32 to vector<8x128xf32>
    %23 = arith.maximumf %21, %22 : vector<8x128xf32>
    %c0_17 = arith.constant 0 : index
    %c0_18 = arith.constant 0 : index
    %24 = vector.load %arg7[%c0_17, %c0_18] : memref<128x128xf32, #tpu.memory_space<vmem>>, vector<128x128xf32>
    %cst_19 = arith.constant dense<0.000000e+00> : vector<8x128xf32>
    %25 = tpu.matmul %23, %24, %cst_19 {dimension_numbers = #tpu.dot_dimension_numbers<[1], [0], [0], [1], [0, 0, 1, 1], [], []>} : vector<8x128xf32>, vector<128x128xf32>, vector<8x128xf32> -> vector<8x128xf32>
    %c0_20 = arith.constant 0 : index
    %c0_21 = arith.constant 0 : index
    %26 = vector.load %arg8[%c0_20, %c0_21] : memref<1x128xf32, #tpu.memory_space<vmem>>, vector<1x128xf32>
    %27 = vector.broadcast %26 : vector<1x128xf32> to vector<8x128xf32>
    %28 = arith.addf %25, %27 : vector<8x128xf32>
    %cst_22 = arith.constant 0.000000e+00 : f32
    %29 = vector.broadcast %cst_22 : f32 to vector<8x128xf32>
    %30 = arith.maximumf %28, %29 : vector<8x128xf32>
    %c0_23 = arith.constant 0 : index
    %c0_24 = arith.constant 0 : index
    %31 = vector.load %arg9[%c0_23, %c0_24] : memref<128x128xf32, #tpu.memory_space<vmem>>, vector<128x128xf32>
    %cst_25 = arith.constant dense<0.000000e+00> : vector<8x128xf32>
    %32 = tpu.matmul %30, %31, %cst_25 {dimension_numbers = #tpu.dot_dimension_numbers<[1], [0], [0], [1], [0, 0, 1, 1], [], []>} : vector<8x128xf32>, vector<128x128xf32>, vector<8x128xf32> -> vector<8x128xf32>
    %c0_26 = arith.constant 0 : index
    %c0_27 = arith.constant 0 : index
    %33 = vector.load %arg10[%c0_26, %c0_27] : memref<1x128xf32, #tpu.memory_space<vmem>>, vector<1x128xf32>
    %34 = vector.broadcast %33 : vector<1x128xf32> to vector<8x128xf32>
    %35 = arith.addf %32, %34 : vector<8x128xf32>
    %c0_28 = arith.constant 0 : index
    %c0_29 = arith.constant 0 : index
    %36 = vector.load %arg11[%c0_28, %c0_29] : memref<8x128xf32, #tpu.memory_space<vmem>>, vector<8x128xf32>
    tpu.vector_store %arg11[%c0_28, %c0_29], %35 {strides = array<i32>} : memref<8x128xf32, #tpu.memory_space<vmem>>, vector<8x128xf32>,
    return
  }
}

</mosaic_0001>

<bundles_post_ra>
// kernel: tpu_custom_call.1
= control target key start
LH: loop header
LB: loop body
LE: loop exit
PB: predicated region body
PF: predicated region fallthrough
CT: control target
= control target key end

     0   :  { %16 = vsyncpa [#allocation3], 0  ;;  %s1168_s0 = inlined_call_operand.vmem [shape: f32[8,1], index: 0, kind: input, shape index: {}]   ;;  %s1169_s1 = inlined_call_operand.vmem [shape: f32[1,128], index: 1, kind: input, shape index: {}]   ;;  %s1170_s2 = inlined_call_operand.vmem [shape: f32[1,128], index: 2, kind: input, shape index: {}]   ;;  %s1171_s3 = inlined_call_operand.hbm [shape: f32[128,128], index: 3, kind: input, shape index: {}]   ;;  %s1172_s4 = inlined_call_operand.vmem [shape: f32[1,128], index: 4, kind: input, shape index: {}]   ;;  %s1173_s5 = inlined_call_operand.hbm [shape: f32[128,128], index: 5, kind: input, shape index: {}]   ;;  %s1174_s6 = inlined_call_operand.vmem [shape: f32[1,128], index: 6, kind: input, shape index: {}]   ;;  %s1175_s7 = inlined_call_operand.hbm [shape: f32[128,128], index: 7, kind: input, shape index: {}]   ;;  %s1176_s8 = inlined_call_operand.vmem [shape: f32[1,128], index: 8, kind: input, shape index: {}]   ;;  %s1177_s9 = inlined_call_operand.hbm [shape: f32[128,128], index: 9, kind: input, shape index: {}]   ;;  %s1178_s10 = inlined_call_operand.vmem [shape: f32[1,128], index: 10, kind: input, shape index: {}]   ;;  %s1179_s11 = inlined_call_operand.hbm [shape: f32[8,128], index: 11, kind: output, shape index: {}]  }
   0x1   :  { %17 = vsyncpa [#allocation6], 0 }
   0x2   :  { %18 = vsyncpa [#allocation9], 0 }
   0x3   :  { %19 = vsyncpa [#allocation4], 0  ;;  %s950_s17 = smov [#allocation5]   ;;  %s951_s19 = smov [#allocation2]  }
   0x4   :  { %s45_s18 = sshll.u32 %s950_s17, 4  ;;  %s31_s20 = sshll.u32 %s951_s19, 4  ;;  %s46_s18 = int_to_ptr.vmem [resolvable:$true] %s45_s18  ;;  %s1021_s20 = int_to_ptr.vmem [resolvable:$true] %s31_s20 }
   0x5   :  { %s832_s23 = scalar_lea.hbm %s1173_s5, 2048 }
   0x6   :  { %p833_p0 = scmp.ne.s32.totalorder %s1173_s5, %s832_s23  ;;  %p836_p1 = scmp.lt.u32.totalorder %s832_s23, %s1173_s5 }
   0x8   :  { %p838_p2 = pnand %p836_p1, %p833_p0 }
   0xa   :  { %841 = shalt.err (!%p838_p2)
}
   0xb   :  { %s842_s28 = scalar_lea.vmem %s46_s18, 2048  ;;  %p847_p4 = scmp.lt.s32.totalorder %s46_s18, %s46_s18 }
   0xc   :  { %p843_p3 = scmp.ne.s32.totalorder %s46_s18, %s842_s28  ;;  %p848_p5 = scmp.lt.s32.totalorder %s842_s28, %s842_s28 }
   0xe   :  { %p849_p6 = por %p848_p5, %p847_p4 }
  0x10   :  { %p850_p7 = pnand %p849_p6, %p843_p3 }
  0x12   :  { %853 = shalt.err (!%p850_p7)
}
  0x13   :  { %s952_s29 = smov 128   ;;  %s953_s30 = smov 8  }
  0x14   :  { %51 = dma.hbm_to_vmem [thread:$0]  %s1173_s5, 2048, %s46_s18, [#allocation6], %s952_s29, %s952_s29, %s953_s30  }
  0x15   :  { %s854_s16 = scalar_lea.hbm %s1171_s3, 2048 }
  0x16   :  { %p855_p8 = scmp.ne.s32.totalorder %s1171_s3, %s854_s16  ;;  %p858_p9 = scmp.lt.u32.totalorder %s854_s16, %s1171_s3 }
  0x18   :  { %p860_p10 = pnand %p858_p9, %p855_p8 }
  0x1a   :  { %863 = shalt.err (!%p860_p10)
}
  0x1b   :  { %s864_s23 = scalar_lea.vmem %s1021_s20, 2048  ;;  %p869_p12 = scmp.lt.s32.totalorder %s1021_s20, %s1021_s20 }
  0x1c   :  { %p865_p11 = scmp.ne.s32.totalorder %s1021_s20, %s864_s23  ;;  %p870_p13 = scmp.lt.s32.totalorder %s864_s23, %s864_s23 }
  0x1e   :  { %p871_p0 = por %p870_p13, %p869_p12 }
  0x20   :  { %p872_p1 = pnand %p871_p0, %p865_p11 }
  0x22   :  { %875 = shalt.err (!%p872_p1)
}
  0x23   :  { %37 = dma.hbm_to_vmem [thread:$0]  %s1171_s3, 2048, %s1021_s20, [#allocation3], %s952_s29, %s952_s29, %s953_s30  }
  0x24   :  { %s954_s24 = smov [#allocation7]   ;;  %s955_s26 = smov [#allocation8]  }
  0x25   :  { %s59_s25 = sshll.u32 %s954_s24, 4  ;;  %s73_s27 = sshll.u32 %s955_s26, 4  ;;  %s60_s25 = int_to_ptr.vmem [resolvable:$true] %s59_s25  ;;  %s1058_s27 = int_to_ptr.vmem [resolvable:$true] %s73_s27 }
  0x26   :  { %s876_s13 = scalar_lea.hbm %s1175_s7, 2048 }
  0x27   :  { %p877_p2 = scmp.ne.s32.totalorder %s1175_s7, %s876_s13  ;;  %p880_p3 = scmp.lt.u32.totalorder %s876_s13, %s1175_s7 }
  0x29   :  { %p882_p4 = pnand %p880_p3, %p877_p2 }
  0x2b   :  { %885 = shalt.err (!%p882_p4)
}
  0x2c   :  { %s886_s3 = scalar_lea.vmem %s60_s25, 2048  ;;  %p891_p6 = scmp.lt.s32.totalorder %s60_s25, %s60_s25 }
  0x2d   :  { %p887_p5 = scmp.ne.s32.totalorder %s60_s25, %s886_s3  ;;  %p892_p7 = scmp.lt.s32.totalorder %s886_s3, %s886_s3 }
  0x2f   :  { %p893_p8 = por %p892_p7, %p891_p6 }
  0x31   :  { %p894_p9 = pnand %p893_p8, %p887_p5 }
  0x33   :  { %897 = shalt.err (!%p894_p9)
}
  0x34   :  { %65 = dma.hbm_to_vmem [thread:$0]  %s1175_s7, 2048, %s60_s25, [#allocation6], %s952_s29, %s952_s29, %s953_s30  }
  0x35   :  { %s898_s23 = scalar_lea.hbm %s1177_s9, 2048 }
  0x36   :  { %p899_p10 = scmp.ne.s32.totalorder %s1177_s9, %s898_s23  ;;  %p902_p11 = scmp.lt.u32.totalorder %s898_s23, %s1177_s9 }
  0x38   :  { %p904_p12 = pnand %p902_p11, %p899_p10 }
  0x3a   :  { %907 = shalt.err (!%p904_p12)
}
  0x3b   :  { %s908_s28 = scalar_lea.vmem %s1058_s27, 2048  ;;  %p913_p0 = scmp.lt.s32.totalorder %s1058_s27, %s1058_s27 }
  0x3c   :  { %p909_p13 = scmp.ne.s32.totalorder %s1058_s27, %s908_s28  ;;  %p914_p1 = scmp.lt.s32.totalorder %s908_s28, %s908_s28 }
  0x3e   :  { %p915_p2 = por %p914_p1, %p913_p0 }
  0x40   :  { %p916_p3 = pnand %p915_p2, %p909_p13 }
  0x42   :  { %919 = shalt.err (!%p916_p3)
}
  0x43   :  { %79 = dma.hbm_to_vmem [thread:$0]  %s1177_s9, 2048, %s1058_s27, [#allocation9], %s952_s29, %s952_s29, %s953_s30  }
  0x44   :  { %942 = dma.done.wait [#allocation3], 2048  }
  0x45   :  { %943 = vsyncadd [#allocation3], 4294965248 }
  0x46   :  { %944 = dma.done.wait [#allocation6], 4096  }
  0x47   :  { %945 = vsyncadd [#allocation6], 4294963200 }
  0x48   :  { %946 = dma.done.wait [#allocation9], 2048  }
  0x49   :  { %947 = vsyncadd [#allocation9], 4294965248  ;;  %v956_v0 = vmov 0   ;;  %v957_v1 = vmov 0.0|0.0   ;;  %v94_v2 = vld [vmem:[%s1168_s0] sm:$0xff]  ;;  %v117_v3 = vld [vmem:[#allocation2] sm:$0xff] }
  0x4a   :  { %831 = vset.pattern.permute.xlu0 %v956_v0  ;;  %724 = vmatprep.subr.bf16.mxu0 %v957_v1  ;;  %v118_v4 = vld [vmem:[#allocation2 + $0x8] sm:$0xff]  ;;  %v119_v6 = vld [vmem:[#allocation2 + $0x10] sm:$0xff]  ;;  %v120_v7 = vld [vmem:[#allocation2 + $0x18] sm:$0xff]  ;;  %vm958_vm0 = vmmov 0   ;;  %v959_v12 = vmov 0.0   ;;  %s960_s17 = smov [#allocation10]  }
  0x4b   :  { %748 = vmatprep.subr.bf16.mxu1 %v957_v1  ;;  %98 = vperm.xlu0 %831, %v94_v2   ;;  %v725_v5 = vpack.c.bf16 %v118_v4, %v117_v3  ;;  %v728_v8 = vpack.c.bf16 %v120_v7, %v119_v6  ;;  %v121_v9 = vld [vmem:[#allocation2 + $0x20] sm:$0xff]  ;;  %v122_v10 = vld [vmem:[#allocation2 + $0x28] sm:$0xff]  ;;  %v213_v15 = vld [vmem:[#allocation5 + $0x10] sm:$0xff]  ;;  %s499_s3 = sshll.u32 %s960_s17, 4  ;;  %s500_s3 = int_to_ptr.vmem [resolvable:$true] %s499_s3 }
  0x4c   :  { %v731_v11 = vpack.c.bf16 %v122_v10, %v121_v9  ;;  %616 = vmatprep.mubr.msk.f32.mxu0 %vm958_vm0, %v959_v12  ;;  %v211_v13 = vld [vmem:[#allocation5] sm:$0xff]  ;;  %v212_v14 = vld [vmem:[#allocation5 + $0x8] sm:$0xff]  ;;  %v123_v16 = vld [vmem:[#allocation2 + $0x30] sm:$0xff]  ;;  %651 = vmatprep.mubr.msk.f32.mxu1 %vm958_vm0, %v959_v12  ;;  %s920_s20 = scalar_lea.vmem %s500_s3, 128  ;;  %p925_p5 = scmp.lt.s32.totalorder %s500_s3, %s500_s3 }
  0x4d   :  { %726 = vmatpush3.bf16.msra.mxu0 %v725_v5  ;;  %v124_v17 = vld [vmem:[#allocation2 + $0x38] sm:$0xff]  ;;  %v749_v18 = vpack.c.bf16 %v212_v14, %v211_v13  ;;  %v215_v22 = vld [vmem:[#allocation5 + $0x20] sm:$0xff]  ;;  %v216_v23 = vld [vmem:[#allocation5 + $0x28] sm:$0xff]  ;;  %p921_p4 = scmp.ne.s32.totalorder %s500_s3, %s920_s20  ;;  %p926_p6 = scmp.lt.s32.totalorder %s920_s20, %s920_s20 }
  0x4e   :  { %727 = vmatprep.subr.bf16.mxu0 %v957_v1  ;;  %v214_v19 = vld [vmem:[#allocation5 + $0x18] sm:$0xff]  ;;  %v734_v21 = vpack.c.bf16 %v124_v17, %v123_v16  ;;  %v125_v24 = vld [vmem:[#allocation2 + $0x40] sm:$0xff]  ;;  %v126_v25 = vld [vmem:[#allocation2 + $0x48] sm:$0xff]  ;;  %v755_v26 = vpack.c.bf16 %v216_v23, %v215_v22 }
  0x4f   :  { %750 = vmatpush3.bf16.msra.mxu1 %v749_v18  ;;  %v752_v20 = vpack.c.bf16 %v214_v19, %v213_v15  ;;  %v737_v27 = vpack.c.bf16 %v126_v25, %v125_v24  ;;  %v217_v28 = vld [vmem:[#allocation5 + $0x30] sm:$0xff]  ;;  %v218_v29 = vld [vmem:[#allocation5 + $0x38] sm:$0xff]  ;;  %v219_v34 = vld [vmem:[#allocation5 + $0x40] sm:$0xff]  ;;  %p927_p7 = por %p926_p6, %p925_p5 }
  0x50   :  { %751 = vmatprep.subr.bf16.mxu1 %v957_v1  ;;  %v127_v30 = vld [vmem:[#allocation2 + $0x50] sm:$0xff]  ;;  %v128_v31 = vld [vmem:[#allocation2 + $0x58] sm:$0xff]  ;;  %v758_v32 = vpack.c.bf16 %v218_v29, %v217_v28  ;;  %v220_v35 = vld [vmem:[#allocation5 + $0x48] sm:$0xff] }
  0x51   :  { %729 = vmatpush3.bf16.msra.mxu0 %v728_v8  ;;  %v740_v33 = vpack.c.bf16 %v128_v31, %v127_v30  ;;  %v129_v36 = vld [vmem:[#allocation2 + $0x60] sm:$0xff]  ;;  %v130_v37 = vld [vmem:[#allocation2 + $0x68] sm:$0xff]  ;;  %v761_v38 = vpack.c.bf16 %v220_v35, %v219_v34  ;;  %v221_v40 = vld [vmem:[#allocation5 + $0x50] sm:$0xff]  ;;  %p928_p8 = pnand %p927_p7, %p921_p4 }
  0x52   :  { %730 = vmatprep.subr.bf16.mxu0 %v957_v1  ;;  %v743_v39 = vpack.c.bf16 %v130_v37, %v129_v36  ;;  %v222_v41 = vld [vmem:[#allocation5 + $0x58] sm:$0xff]  ;;  %v131_v42 = vld [vmem:[#allocation2 + $0x70] sm:$0xff]  ;;  %v223_v46 = vld [vmem:[#allocation5 + $0x60] sm:$0xff] }
  0x53   :  { %753 = vmatpush3.bf16.msra.mxu1 %v752_v20  ;;  %v132_v43 = vld [vmem:[#allocation2 + $0x78] sm:$0xff]  ;;  %v764_v44 = vpack.c.bf16 %v222_v41, %v221_v40  ;;  %v224_v47 = vld [vmem:[#allocation5 + $0x68] sm:$0xff]  ;;  %v225_v55 = vld [vmem:[#allocation5 + $0x70] sm:$0xff] }
  0x54   :  { %754 = vmatprep.subr.bf16.mxu1 %v957_v1  ;;  %v746_v45 = vpack.c.bf16 %v132_v43, %v131_v42  ;;  %v767_v48 = vpack.c.bf16 %v224_v47, %v223_v46  ;;  %v510_v49 = vld [vmem:[%s1169_s1] ss:$0 sm:$0xff]  ;;  %v226_v56 = vld [vmem:[#allocation5 + $0x78] sm:$0xff]  ;;  %v305_v58 = vld [vmem:[#allocation7] sm:$0xff] }
  0x55   :  { %732 = vmatpush3.bf16.msra.mxu0 %v731_v11  ;;  %v511_v50 = vld [vmem:[%s1170_s2] ss:$0 sm:$0xff]  ;;  %v770_v57 = vpack.c.bf16 %v226_v56, %v225_v55  ;;  %v307_v60 = vld [vmem:[#allocation7 + $0x10] sm:$0xff]  ;;  %v308_v62 = vld [vmem:[#allocation7 + $0x18] sm:$0xff] }
  0x56   :  { %733 = vmatprep.subr.bf16.mxu0 %v957_v1  ;;  %v306_v59 = vld [vmem:[#allocation7 + $0x8] sm:$0xff]  ;;  %v776_v63 = vpack.c.bf16 %v308_v62, %v307_v60  ;;  %v309_v0 = vld [vmem:[#allocation7 + $0x20] sm:$0xff]  ;;  %v311_v4 = vld [vmem:[#allocation7 + $0x30] sm:$0xff] }
  0x57   :  { %756 = vmatpush3.bf16.msra.mxu1 %v755_v26  ;;  %v773_v61 = vpack.c.bf16 %v306_v59, %v305_v58  ;;  %v310_v2 = vld [vmem:[#allocation7 + $0x28] sm:$0xff]  ;;  %v312_v5 = vld [vmem:[#allocation7 + $0x38] sm:$0xff]  ;;  %v313_v7 = vld [vmem:[#allocation7 + $0x40] sm:$0xff] }
  0x58   :  { %757 = vmatprep.subr.bf16.mxu1 %v957_v1  ;;  %v779_v3 = vpack.c.bf16 %v310_v2, %v309_v0  ;;  %v782_v6 = vpack.c.bf16 %v312_v5, %v311_v4  ;;  %v314_v8 = vld [vmem:[#allocation7 + $0x48] sm:$0xff]  ;;  %v315_v10 = vld [vmem:[#allocation7 + $0x50] sm:$0xff]  ;;  %v316_v11 = vld [vmem:[#allocation7 + $0x58] sm:$0xff] }
  0x59   :  { %735 = vmatpush3.bf16.msra.mxu0 %v734_v21  ;;  %v785_v9 = vpack.c.bf16 %v314_v8, %v313_v7  ;;  %v788_v13 = vpack.c.bf16 %v316_v11, %v315_v10  ;;  %v317_v14 = vld [vmem:[#allocation7 + $0x60] sm:$0xff]  ;;  %v318_v15 = vld [vmem:[#allocation7 + $0x68] sm:$0xff]  ;;  %v319_v22 = vld [vmem:[#allocation7 + $0x70] sm:$0xff] }
  0x5a   :  { %736 = vmatprep.subr.bf16.mxu0 %v957_v1  ;;  %v791_v16 = vpack.c.bf16 %v318_v15, %v317_v14  ;;  %v512_v17 = vld [vmem:[%s1172_s4] ss:$0 sm:$0xff]  ;;  %v320_v23 = vld [vmem:[#allocation7 + $0x78] sm:$0xff]  ;;  %v399_v25 = vld [vmem:[#allocation8] sm:$0xff] }
  0x5b   :  { %759 = vmatpush3.bf16.msra.mxu1 %v758_v32  ;;  %v794_v24 = vpack.c.bf16 %v320_v23, %v319_v22  ;;  %v400_v26 = vld [vmem:[#allocation8 + $0x8] sm:$0xff]  ;;  %v402_v29 = vld [vmem:[#allocation8 + $0x18] sm:$0xff]  ;;  %v403_v31 = vld [vmem:[#allocation8 + $0x20] sm:$0xff] }
  0x5c   :  { %760 = vmatprep.subr.bf16.mxu1 %v957_v1  ;;  %v797_v28 = vpack.c.bf16 %v400_v26, %v399_v25  ;;  %v404_v32 = vld [vmem:[#allocation8 + $0x28] sm:$0xff]  ;;  %v406_v34 = vld [vmem:[#allocation8 + $0x38] sm:$0xff]  ;;  %v407_v36 = vld [vmem:[#allocation8 + $0x40] sm:$0xff] }
  0x5d   :  { %738 = vmatpush3.bf16.msra.mxu0 %v737_v27  ;;  %v401_v27 = vld [vmem:[#allocation8 + $0x10] sm:$0xff]  ;;  %v408_v37 = vld [vmem:[#allocation8 + $0x48] sm:$0xff]  ;;  %v410_v40 = vld [vmem:[#allocation8 + $0x58] sm:$0xff] }
  0x5e   :  { %739 = vmatprep.subr.bf16.mxu0 %v957_v1  ;;  %v800_v30 = vpack.c.bf16 %v402_v29, %v401_v27  ;;  %v411_v42 = vld [vmem:[#allocation8 + $0x60] sm:$0xff]  ;;  %v412_v43 = vld [vmem:[#allocation8 + $0x68] sm:$0xff] }
  0x5f   :  { %762 = vmatpush3.bf16.msra.mxu1 %v761_v38  ;;  %v809_v38 = vpack.c.bf16 %v408_v37, %v407_v36 }
  0x60   :  { %763 = vmatprep.subr.bf16.mxu1 %v957_v1 }
  0x61   :  { %741 = vmatpush3.bf16.msra.mxu0 %v740_v33  ;;  %v803_v33 = vpack.c.bf16 %v404_v32, %v403_v31 }
  0x62   :  { %742 = vmatprep.subr.bf16.mxu0 %v957_v1 }
  0x63   :  { %765 = vmatpush3.bf16.msra.mxu1 %v764_v44  ;;  %v815_v44 = vpack.c.bf16 %v412_v43, %v411_v42 }
  0x64   :  { %766 = vmatprep.subr.bf16.mxu1 %v957_v1 }
  0x65   :  { %744 = vmatpush3.bf16.msra.mxu0 %v743_v39  ;;  %v409_v39 = vld [vmem:[#allocation8 + $0x50] sm:$0xff] }
  0x66   :  { %745 = vmatprep.subr.bf16.mxu0 %v957_v1  ;;  %v812_v41 = vpack.c.bf16 %v410_v40, %v409_v39 }
  0x67   :  { %768 = vmatpush3.bf16.msra.mxu1 %v767_v48 }
  0x68   :  { %769 = vmatprep.subr.bf16.mxu1 %v957_v1 }
  0x69   :  { %747 = vmatpush3.bf16.msra.mxu0 %v746_v45  ;;  %v513_v45 = vld [vmem:[%s1174_s6] ss:$0 sm:$0xff] }
  0x6a   :  { %772 = vmatprep.subr.bf16.mxu0 %v957_v1 }
  0x6b   :  { %771 = vmatpush3.bf16.msra.mxu1 %v770_v57  ;;  %v515_v57 = vld [vmem:[%s1178_s10] ss:$0 sm:$0xff] }
  0x6c   :  { %796 = vmatprep.subr.bf16.mxu1 %v957_v1 }
  0xca   :  { %v99_v51 = vpop.permute.xlu0 %98 }
  0xcb   :  { %v107_v52 = vmul.f32 %v510_v49, %v99_v51  ;;  %v414_v51 = vld [vmem:[#allocation8 + $0x78] sm:$0xff] }
  0xcd   :  { %v115_v53 = vadd.f32 %v511_v50, %v107_v52  ;;  %v413_v50 = vld [vmem:[#allocation8 + $0x70] sm:$0xff] }
  0xce   :  { %v818_v52 = vpack.c.bf16 %v414_v51, %v413_v50 }
  0xcf   :  { %v116_v54 = vmax.f32 %v115_v53, 0.0  ;;  %v514_v53 = vld [vmem:[%s1176_s8] ss:$0 sm:$0xff] }
  0xd1   :  { %617 = vmatmul.mubr.f32.vlgmr.msra.gmra.mrb[0].mxu0 %v116_v54 }
  0xd2   :  { %686 = vmatprep.mubr.msk.f32.mxu0 %vm958_vm0, %v959_v12  ;;  %774 = vmatpush3.bf16.msra.mxu0 %v773_v61 }
  0xd3   :  { %775 = vmatprep.subr.bf16.mxu0 %v957_v1 }
  0xd6   :  { %777 = vmatpush3.bf16.msra.mxu0 %v776_v63 }
  0xd7   :  { %778 = vmatprep.subr.bf16.mxu0 %v957_v1 }
  0xda   :  { %780 = vmatpush3.bf16.msra.mxu0 %v779_v3 }
  0xdb   :  { %781 = vmatprep.subr.bf16.mxu0 %v957_v1 }
  0xde   :  { %783 = vmatpush3.bf16.msra.mxu0 %v782_v6 }
  0xdf   :  { %784 = vmatprep.subr.bf16.mxu0 %v957_v1 }
  0xe2   :  { %786 = vmatpush3.bf16.msra.mxu0 %v785_v9 }
  0xe3   :  { %787 = vmatprep.subr.bf16.mxu0 %v957_v1 }
  0xe6   :  { %789 = vmatpush3.bf16.msra.mxu0 %v788_v13 }
  0xe7   :  { %790 = vmatprep.subr.bf16.mxu0 %v957_v1 }
  0xea   :  { %792 = vmatpush3.bf16.msra.mxu0 %v791_v16 }
  0xeb   :  { %793 = vmatprep.subr.bf16.mxu0 %v957_v1 }
  0xee   :  { %795 = vmatpush3.bf16.msra.mxu0 %v794_v24 }
 0x1a4   :  { %v206_v18 = vpop.f32.mrb[0].mxu0 }
 0x1a5   :  { %v207_v19 = vadd.f32 %v512_v17, %v206_v18  ;;  %v618_v20 = vpop.f32.mrb[1].mxu0 }
 0x1a7   :  { %v210_v21 = vmax.f32 %v207_v19, 0.0 }
 0x1a9   :  { %652 = vmatmul.mubr.f32.vlgmr.msra.gmra.mrb[0].mxu1 %v210_v21 }
 0x1aa   :  { %721 = vmatprep.mubr.msk.f32.mxu1 %vm958_vm0, %v959_v12  ;;  %798 = vmatpush3.bf16.msra.mxu1 %v797_v28  ;;  %v405_v12 = vld [vmem:[#allocation8 + $0x30] sm:$0xff] }
 0x1ab   :  { %799 = vmatprep.subr.bf16.mxu1 %v957_v1  ;;  %v806_v35 = vpack.c.bf16 %v406_v34, %v405_v12 }
 0x1ae   :  { %801 = vmatpush3.bf16.msra.mxu1 %v800_v30 }
 0x1af   :  { %802 = vmatprep.subr.bf16.mxu1 %v957_v1 }
 0x1b2   :  { %804 = vmatpush3.bf16.msra.mxu1 %v803_v33 }
 0x1b3   :  { %805 = vmatprep.subr.bf16.mxu1 %v957_v1 }
 0x1b6   :  { %807 = vmatpush3.bf16.msra.mxu1 %v806_v35 }
 0x1b7   :  { %808 = vmatprep.subr.bf16.mxu1 %v957_v1 }
 0x1ba   :  { %810 = vmatpush3.bf16.msra.mxu1 %v809_v38 }
 0x1bb   :  { %811 = vmatprep.subr.bf16.mxu1 %v957_v1 }
 0x1be   :  { %813 = vmatpush3.bf16.msra.mxu1 %v812_v41 }
 0x1bf   :  { %814 = vmatprep.subr.bf16.mxu1 %v957_v1 }
 0x1c2   :  { %816 = vmatpush3.bf16.msra.mxu1 %v815_v44 }
 0x1c3   :  { %817 = vmatprep.subr.bf16.mxu1 %v957_v1 }
 0x1c6   :  { %819 = vmatpush3.bf16.msra.mxu1 %v818_v52 }
 0x27c   :  { %v300_v46 = vpop.f32.mrb[0].mxu1 }
 0x27d   :  { %v301_v47 = vadd.f32 %v513_v45, %v300_v46  ;;  %v653_v48 = vpop.f32.mrb[1].mxu1 }
 0x27f   :  { %v304_v49 = vmax.f32 %v301_v47, 0.0 }
 0x281   :  { %687 = vmatmul.mubr.f32.vlgmr.msra.gmra.mrb[2].mxu0 %v304_v49 }
 0x354   :  { %v394_v54 = vpop.f32.mrb[2].mxu0 }
 0x355   :  { %v395_v55 = vadd.f32 %v514_v53, %v394_v54  ;;  %v688_v1 = vpop.f32.mrb[3].mxu0 }
 0x357   :  { %v398_v56 = vmax.f32 %v395_v55, 0.0 }
 0x359   :  { %722 = vmatmul.mubr.f32.vlgmr.msra.gmra.mrb[2].mxu1 %v398_v56 }
 0x42c   :  { %v488_v58 = vpop.f32.mrb[2].mxu1 }
 0x42d   :  { %v489_v59 = vadd.f32 %v515_v57, %v488_v58  ;;  %v723_v60 = vpop.f32.mrb[3].mxu1 }
 0x42f   :  { %492 = vst [vmem:[#allocation10] sm:$0xff] %v489_v59 }
 0x430   :  { %931 = shalt.err (!%p928_p8)
}
 0x431   :  { %s932_s21 = scalar_lea.hbm %s1179_s11, 128 }
 0x432   :  { %p933_p9 = scmp.ne.s32.totalorder %s1179_s11, %s932_s21  ;;  %p936_p10 = scmp.lt.u32.totalorder %s932_s21, %s1179_s11 }
 0x434   :  { %p938_p11 = pnand %p936_p10, %p933_p9 }
 0x436   :  { %941 = shalt.err (!%p938_p11)
}
 0x437   :  { %502 = dma.vmem_to_hbm [thread:$0]  %s500_s3, 128, %s1179_s11, [#allocation4]  }
 0x438   :  { %948 = dma.done.wait [#allocation4], 128  }
 0x439   :  { %949 = vsyncadd [#allocation4], 4294967168 }
 0x43a   :  { %506 = vsyncpa [#allocation3], 1 }
 0x43b   :  { %507 = vsyncpa [#allocation6], 1 }
 0x43c   :  { %508 = vsyncpa [#allocation9], 1 }
 0x43d   :  { %509 = vsyncpa [#allocation4], 1 }

</bundles_post_ra>
